<compile_context>
chip_gen: v7x
topology: tpu7x:2x2x1
jax: 0.10.0
libtpu: 0.0.40
codegen_flags: <defaults>
</compile_context>

<pallas_src>
import functools

import jax
import jax.numpy as jnp
from jax.experimental import pallas as pl
from jax.experimental.pallas import tpu as pltpu


# ---------------------------------------------------------------------------
# Fused single-pass kernel: 1 HBM read + 1 HBM write of x per batch.
# ---------------------------------------------------------------------------
def _fused_kernel(x_ref, w1t_ref, w2t_ref, o_ref, *, inv_hw):
    xf = x_ref[...].astype(jnp.float32)                         # (1, C, HW)
    y = jnp.sum(xf, axis=-1) * inv_hw                           # (1, C) mean
    h = jnp.maximum(
        jnp.dot(y, w1t_ref[...], preferred_element_type=jnp.float32), 0.0)
    s = jax.nn.sigmoid(
        jnp.dot(h, w2t_ref[...], preferred_element_type=jnp.float32))  # (1, C)
    o_ref[...] = (xf * s[:, :, None]).astype(o_ref.dtype)


# ---------------------------------------------------------------------------
# Streaming phase 1: per-channel spatial sum (adaptive-avg-pool numerator).
# ---------------------------------------------------------------------------
def _channel_sum_kernel(x_ref, sum_ref, *, hw_total, hw_tile):
    t = pl.program_id(1)

    @pl.when(t == 0)
    def _():
        sum_ref[...] = jnp.zeros_like(sum_ref)

    def accum(mask_tail):
        x = x_ref[...].astype(jnp.float32)                      # (1, C, hw_tile)
        if mask_tail:
            # Mask lanes past the true spatial extent so the (unspecified)
            # out-of-bounds padding never biases the average.
            lane = jax.lax.broadcasted_iota(jnp.int32, x.shape, dimension=2)
            x = jnp.where((t * hw_tile + lane) < hw_total, x, 0.0)
        # keepdims -> result stays a (C, 1) sublane column: no lane relayout.
        sum_ref[...] += jnp.sum(x, axis=-1, keepdims=True)

    if hw_total % hw_tile != 0:
        n_last = pl.num_programs(1) - 1

        @pl.when(t < n_last)        # remainder masking only on the LAST tile
        def _():
            accum(False)

        @pl.when(t == n_last)
        def _():
            accum(True)
    else:
        accum(False)


# ---------------------------------------------------------------------------
# Streaming phase 2: in-kernel SE MLP gate + channel-wise rescale.
# ---------------------------------------------------------------------------
def _scale_kernel(x_ref, sums_ref, w1t_ref, w2t_ref, o_ref, *, inv_hw):
    # Tiny SE MLP recomputed per tile: costs ~nothing vs the tile DMA, removes
    # the inter-call XLA gap, and keeps BOTH grid axes "parallel" (no
    # cross-step scratch dependency) so megacore sharding works even at B=1.
    y = sums_ref[...].reshape(1, -1) * inv_hw                   # (1, C) f32
    h = jnp.maximum(
        jnp.dot(y, w1t_ref[...], preferred_element_type=jnp.float32), 0.0)
    s = jax.nn.sigmoid(
        jnp.dot(h, w2t_ref[...], preferred_element_type=jnp.float32))  # (1, C)
    # Remainder tile: the padded lanes get multiplied too, but Pallas masks
    # the partial writeback of the edge block so padding never lands in HBM.
    o_ref[...] = (x_ref[...].astype(jnp.float32) * s[:, :, None]).astype(o_ref.dtype)


def _pick_hw_tile(hw, c, itemsize, target_bytes=2 << 20):
    """Lane-aligned streaming tile sized C/dtype-aware to ~2 MiB blocks."""
    if hw <= 256:
        return hw                      # a single full-extent block
    tile = (target_bytes // max(c * itemsize, 1)) // 128 * 128
    tile = max(tile, 128)
    tile = min(tile, (hw // 128) * 128)
    return int(tile)


@functools.partial(jax.jit, static_argnames=("hw_tile", "force_streaming"))
def basic_attention_pallas(x_nchw, w1, w2, *, hw_tile=None, force_streaming=False):
    """x_nchw: (B, C, H, W).
    w1: (C//16, C)  -- PyTorch Linear(in=C, out=C//16, bias=False) weight
    w2: (C, C//16)  -- PyTorch Linear(in=C//16, out=C, bias=False) weight
    Returns (B, C, H, W), same dtype as x.
    """
    B, C, H, W = x_nchw.shape
    HW = H * W
    dtype = x_nchw.dtype
    itemsize = jnp.dtype(dtype).itemsize
    inv_hw = 1.0 / HW

    # Pre-transpose the MLP weights and zero-pad the squeeze dim to a full
    # lane tile (exact: the padded columns/rows are zero, so ReLU(0)=0 and
    # the second matmul adds nothing).  Keeps both in-kernel dots lane-dense.
    Cr = w1.shape[0]
    Crp = ((Cr + 127) // 128) * 128
    w1t = jnp.zeros((C, Crp), jnp.float32).at[:, :Cr].set(w1.astype(jnp.float32).T)
    w2t = jnp.zeros((Crp, C), jnp.float32).at[:Cr, :].set(w2.astype(jnp.float32).T)

    x = x_nchw.reshape(B, C, HW)
    mlp_flops = 4 * C * Crp  # per gate evaluation

    # ---- Fused single pass when the per-batch (C, HW) slab fits VMEM ------
    slab = C * HW * itemsize
    # 2x double-buffered input + 2x double-buffered output + f32 temp + weights
    fused_need = 4 * slab + C * HW * 4 + 2 * C * Crp * 4 + (4 << 20)
    if not force_streaming and fused_need <= (40 << 20):
        out = pl.pallas_call(
            functools.partial(_fused_kernel, inv_hw=inv_hw),
            out_shape=jax.ShapeDtypeStruct((B, C, HW), dtype),
            grid_spec=pltpu.PrefetchScalarGridSpec(
                num_scalar_prefetch=0,
                grid=(B,),
                in_specs=[
                    pl.BlockSpec((1, C, HW), lambda b: (b, 0, 0)),
                    pl.BlockSpec((C, Crp), lambda b: (0, 0)),
                    pl.BlockSpec((Crp, C), lambda b: (0, 0)),
                ],
                out_specs=pl.BlockSpec((1, C, HW), lambda b: (b, 0, 0)),
            ),
            compiler_params=pltpu.CompilerParams(
                dimension_semantics=("parallel",),
                vmem_limit_bytes=int(max(fused_need, 32 << 20)),
            ),
            cost_estimate=pl.CostEstimate(
                flops=2 * B * C * HW + B * mlp_flops,
                transcendentals=B * C,
                bytes_accessed=2 * B * C * HW * itemsize,
            ),
        )(x, w1t, w2t)
        return out.reshape(B, C, H, W)

    # ---- Streaming two-phase path ------------------------------------------
    if hw_tile is None:
        hw_tile = _pick_hw_tile(HW, C, itemsize)
    assert hw_tile == HW or (hw_tile % 128 == 0 and hw_tile <= HW), (
        "hw_tile must equal H*W or be a multiple of 128 that is <= H*W")
    n_hw = pl.cdiv(HW, hw_tile)
    blk = C * hw_tile * itemsize

    # Phase 1: per-channel spatial sums (f32 accumulation).
    sums = pl.pallas_call(
        functools.partial(_channel_sum_kernel, hw_total=HW, hw_tile=hw_tile),
        out_shape=jax.ShapeDtypeStruct((B, C, 1), jnp.float32),
        grid_spec=pltpu.PrefetchScalarGridSpec(
            num_scalar_prefetch=0,
            grid=(B, n_hw),
            in_specs=[pl.BlockSpec((1, C, hw_tile), lambda b, t: (b, 0, t))],
            out_specs=pl.BlockSpec((1, C, 1), lambda b, t: (b, 0, 0)),
        ),
        compiler_params=pltpu.CompilerParams(
            dimension_semantics=("parallel", "arbitrary"),
            vmem_limit_bytes=int(max(2 * blk + C * hw_tile * 4 + (4 << 20),
                                     32 << 20)),
        ),
        cost_estimate=pl.CostEstimate(
            flops=B * C * HW,
            transcendentals=0,
            bytes_accessed=B * C * HW * itemsize + B * C * 4,
        ),
    )(x)

    # Phase 2: streamed channel-wise rescale with the SE MLP fused in-kernel.
    out = pl.pallas_call(
        functools.partial(_scale_kernel, inv_hw=inv_hw),
        out_shape=jax.ShapeDtypeStruct((B, C, HW), dtype),
        grid_spec=pltpu.PrefetchScalarGridSpec(
            num_scalar_prefetch=0,
            grid=(B, n_hw),
            in_specs=[
                pl.BlockSpec((1, C, hw_tile), lambda b, t: (b, 0, t)),
                pl.BlockSpec((1, C, 1), lambda b, t: (b, 0, 0)),
                pl.BlockSpec((C, Crp), lambda b, t: (0, 0)),
                pl.BlockSpec((Crp, C), lambda b, t: (0, 0)),
            ],
            out_specs=pl.BlockSpec((1, C, hw_tile), lambda b, t: (b, 0, t)),
        ),
        compiler_params=pltpu.CompilerParams(
            dimension_semantics=("parallel", "parallel"),
            vmem_limit_bytes=int(max(4 * blk + C * hw_tile * 4 + (4 << 20),
                                     32 << 20)),
        ),
        cost_estimate=pl.CostEstimate(
            flops=2 * B * C * HW + B * n_hw * mlp_flops,
            transcendentals=B * n_hw * C,
            bytes_accessed=2 * B * C * HW * itemsize + B * C * 4,
        ),
    )(x, sums, w1t, w2t)
    return out.reshape(B, C, H, W)


def basic_attention_ref(x_nchw, w1, w2):
    """Pure-JAX reference matching the PyTorch forward."""
    y = jnp.mean(x_nchw, axis=(2, 3))                 # (B, C)
    h = jnp.maximum(y @ w1.T, 0.0)                    # (B, C//16)
    s = jax.nn.sigmoid(h @ w2.T)                      # (B, C)
    return x_nchw * s[:, :, None, None]


if __name__ == "__main__":
    key = jax.random.PRNGKey(0)
    kx, kw1, kw2, kx2 = jax.random.split(key, 4)

    # in_channels >= 16 so that in_channels // 16 >= 1.
    B, C = 2, 32
    Cr = C // 16
    w1 = jax.random.normal(kw1, (Cr, C), dtype=jnp.float32) * 0.1
    w2 = jax.random.normal(kw2, (C, Cr), dtype=jnp.float32) * 0.1

    # Test 1: default (fused single-pass) path.
    H, W = 16, 16
    x = jax.random.normal(kx, (B, C, H, W), dtype=jnp.float32)
    ref = basic_attention_ref(x, w1, w2)
    out_fused = jax.block_until_ready(basic_attention_pallas(x, w1, w2))
    assert out_fused.shape == (B, C, H, W)
    assert jnp.allclose(out_fused, ref, atol=1e-5, rtol=1e-5), "fused path mismatch"

    # Test 2: streaming two-phase path, lane-aligned tiles (HW=256 -> 2 tiles).
    out_stream = jax.block_until_ready(
        basic_attention_pallas(x, w1, w2, hw_tile=128, force_streaming=True))
    assert jnp.allclose(out_stream, ref, atol=1e-5, rtol=1e-5), "streaming path mismatch"

    # Test 3: streaming path with ragged spatial extent (HW=144) -> exercises
    # the masked remainder tile in the mean and the masked writeback tail.
    H2, W2 = 12, 12
    x2 = jax.random.normal(kx2, (B, C, H2, W2), dtype=jnp.float32)
    ref2 = basic_attention_ref(x2, w1, w2)
    out2 = jax.block_until_ready(
        basic_attention_pallas(x2, w1, w2, hw_tile=128, force_streaming=True))
    assert out2.shape == (B, C, H2, W2)
    assert jnp.allclose(out2, ref2, atol=1e-5, rtol=1e-5), "ragged streaming mismatch"

    print("KERNEL_OK")
</pallas_src>

<mosaic_0001>
module attributes {stable_mosaic.version = 11 : i64} {
  func.func @_fused_kernel(%arg0: i32, %arg1: memref<1x32x256xf32, #tpu.memory_space<vmem>>, %arg2: memref<32x128xf32, #tpu.memory_space<vmem>>, %arg3: memref<128x32xf32, #tpu.memory_space<vmem>>, %arg4: memref<1x32x256xf32, #tpu.memory_space<vmem>>) attributes {dimension_semantics = [#tpu.dimension_semantics<parallel>], iteration_bounds = array<i64: 2>, scalar_prefetch = 0 : i64, scratch_operands = 0 : i64, tpu.core_type = #tpu.core_type<tc>, window_params = [{transform_indices = @transform_0, window_bounds = array<i64: 1, 32, 256>}, {pipeline_mode = #tpu.pipeline_mode<synchronous>, transform_indices = @transform_1, window_bounds = array<i64: 32, 128>}, {pipeline_mode = #tpu.pipeline_mode<synchronous>, transform_indices = @transform_2, window_bounds = array<i64: 128, 32>}, {transform_indices = @transform_3, window_bounds = array<i64: 1, 32, 256>}]} {
    %c0 = arith.constant 0 : index
    %c0_0 = arith.constant 0 : index
    %c0_1 = arith.constant 0 : index
    %0 = vector.load %arg1[%c0, %c0_0, %c0_1] : memref<1x32x256xf32, #tpu.memory_space<vmem>>, vector<1x32x256xf32>
    %cst = arith.constant dense<0.000000e+00> : vector<1x32xf32>
    %1 = vector.multi_reduction <add>, %0, %cst [2] : vector<1x32x256xf32> to vector<1x32xf32>
    %cst_2 = arith.constant 3.906250e-03 : f32
    %2 = vector.broadcast %cst_2 : f32 to vector<1x32xf32>
    %3 = arith.mulf %1, %2 : vector<1x32xf32>
    %c0_3 = arith.constant 0 : index
    %c0_4 = arith.constant 0 : index
    %4 = vector.load %arg2[%c0_3, %c0_4] : memref<32x128xf32, #tpu.memory_space<vmem>>, vector<32x128xf32>
    %cst_5 = arith.constant dense<0.000000e+00> : vector<1x128xf32>
    %5 = tpu.matmul %3, %4, %cst_5 {dimension_numbers = #tpu.dot_dimension_numbers<[1], [0], [0], [1], [0, 0, 1, 1], [], []>} : vector<1x32xf32>, vector<32x128xf32>, vector<1x128xf32> -> vector<1x128xf32>
    %cst_6 = arith.constant 0.000000e+00 : f32
    %6 = vector.broadcast %cst_6 : f32 to vector<1x128xf32>
    %7 = arith.maximumf %5, %6 : vector<1x128xf32>
    %c0_7 = arith.constant 0 : index
    %c0_8 = arith.constant 0 : index
    %8 = vector.load %arg3[%c0_7, %c0_8] : memref<128x32xf32, #tpu.memory_space<vmem>>, vector<128x32xf32>
    %cst_9 = arith.constant dense<0.000000e+00> : vector<1x32xf32>
    %9 = tpu.matmul %7, %8, %cst_9 {dimension_numbers = #tpu.dot_dimension_numbers<[1], [0], [0], [1], [0, 0, 1, 1], [], []>} : vector<1x128xf32>, vector<128x32xf32>, vector<1x32xf32> -> vector<1x32xf32>
    %10 = arith.negf %9 : vector<1x32xf32>
    %11 = math.exp %10 : vector<1x32xf32>
    %cst_10 = arith.constant 1.000000e+00 : f32
    %12 = vector.broadcast %cst_10 : f32 to vector<1x32xf32>
    %13 = arith.addf %12, %11 : vector<1x32xf32>
    %14 = arith.divf %12, %13 : vector<1x32xf32>
    %15 = vector.shape_cast %14 : vector<1x32xf32> to vector<1x32x1xf32>
    %16 = vector.broadcast %15 : vector<1x32x1xf32> to vector<1x32x256xf32>
    %17 = arith.mulf %0, %16 : vector<1x32x256xf32>
    %c0_11 = arith.constant 0 : index
    %c0_12 = arith.constant 0 : index
    %c0_13 = arith.constant 0 : index
    %18 = vector.load %arg4[%c0_11, %c0_12, %c0_13] : memref<1x32x256xf32, #tpu.memory_space<vmem>>, vector<1x32x256xf32>
    tpu.vector_store %arg4[%c0_11, %c0_12, %c0_13], %17 {strides = array<i32>} : memref<1x32x256xf32, #tpu.memory_space<vmem>>, vector<1x32x256xf32>,
    return
  }
  func.func @transform_0(%arg0: i32) -> (i32, i32, i32) {
    %c0_i32 = arith.constant 0 : i32
    %c0_i32_0 = arith.constant 0 : i32
    %c0_i32_1 = arith.constant 0 : i32
    return %arg0, %c0_i32, %c0_i32_0 : i32, i32, i32
  }
  func.func @transform_1(%arg0: i32) -> (i32, i32) {
    %c0_i32 = arith.constant 0 : i32
    %c0_i32_0 = arith.constant 0 : i32
    %c0_i32_1 = arith.constant 0 : i32
    return %c0_i32, %c0_i32_0 : i32, i32
  }
  func.func @transform_2(%arg0: i32) -> (i32, i32) {
    %c0_i32 = arith.constant 0 : i32
    %c0_i32_0 = arith.constant 0 : i32
    %c0_i32_1 = arith.constant 0 : i32
    return %c0_i32, %c0_i32_0 : i32, i32
  }
  func.func @transform_3(%arg0: i32) -> (i32, i32, i32) {
    %c0_i32 = arith.constant 0 : i32
    %c0_i32_0 = arith.constant 0 : i32
    %c0_i32_1 = arith.constant 0 : i32
    return %arg0, %c0_i32, %c0_i32_0 : i32, i32, i32
  }
}

</mosaic_0001>

<bundles_post_ra>
// kernel: basic_attention_pallas.1
= control target key start
LH: loop header
LB: loop body
LE: loop exit
PB: predicated region body
PF: predicated region fallthrough
CT: control target
= control target key end

     0   :  { %s645_s12 = smov 0   ;;  %s761_s0 = inlined_call_operand.vmem [shape: f32[2,32,256], index: 0, kind: input, shape index: {}]   ;;  %s762_s1 = inlined_call_operand.vmem [shape: f32[32,128], index: 1, kind: input, shape index: {}]   ;;  %s763_s2 = inlined_call_operand.vmem [shape: f32[128,32], index: 2, kind: input, shape index: {}]   ;;  %s764_s3 = inlined_call_operand.vmem [shape: f32[2,32,256], index: 3, kind: output, shape index: {}]  }
   0x1 LB: > { %s486_s13 = sadd.s32 4294967295, %s620_s12   ;;  %p490_p0 = scmp.ge.s32.totalorder %s620_s12, 1  ;;  %s620_s12 = sphi %s645_s12, %s13_s12  }
   0x2   : > { %p137_p1 = scmp.lt.s32.totalorder %s620_s12, 3 }
   0x4   : > { %p138_p2 = pnand %p490_p0, %p137_p1 }
   0x5   : > { %p161_p3 = scmp.lt.s32.totalorder (!%p138_p2), %s486_s13, 1  ;;  %v195_v12 = vld [vmem:[%s762_s1] sm:$0xff] (!%p138_p2)  ;;  %v196_v13 = vld [vmem:[%s762_s1 + $0x8] sm:$0xff] (!%p138_p2)  ;;  %v622_v15 = vmov (!%p138_p2), 0.0|0.0   ;;  %v197_v16 = vld [vmem:[%s762_s1 + $0x10] sm:$0xff] (!%p138_p2)  ;;  %vm623_vm0 = vmmov (!%p138_p2), 0   ;;  %v203_v41 = vlaneseq (!%p138_p2) }
   0x6   : > { %141 = sbr.rel (%p138_p2) target bundleno = 752 (0x2f0), region = 32  ;;  %v570_v14 = vpack.c.bf16 (!%p138_p2), %v196_v13, %v195_v12  ;;  %569 = vmatprep.subr.bf16.mxu0 (!%p138_p2), %v622_v15  ;;  %575 = vmatprep.subr.bf16.mxu1 (!%p138_p2), %v622_v15  ;;  %v198_v17 = vld [vmem:[%s762_s1 + $0x18] sm:$0xff] (!%p138_p2)  ;;  %v624_v19 = vmov (!%p138_p2), 0.0   ;;  %v304_v20 = vld [vmem:[%s763_s2] sm:$0xff] (!%p138_p2)  ;;  %v305_v21 = vld [vmem:[%s763_s2 + $0x8] sm:$0xff] (!%p138_p2)  ;;  %vm214_vm1 = vcmask (!%p138_p2), 130112  }
   0x7   : > { %v573_v18 = vpack.c.bf16 (!%p138_p2), %v198_v17, %v197_v16  ;;  %531 = vmatprep.mubr.msk.f32.mxu0 (!%p138_p2), %vm623_vm0, %v624_v19  ;;  %566 = vmatprep.mubr.msk.f32.mxu1 (!%p138_p2), %vm623_vm0, %v624_v19  ;;  %v306_v22 = vld [vmem:[%s763_s2 + $0x10] sm:$0xff] (!%p138_p2)  ;;  %v576_v23 = vpack.c.bf16 (!%p138_p2), %v305_v21, %v304_v20  ;;  %v307_v24 = vld [vmem:[%s763_s2 + $0x18] sm:$0xff] (!%p138_p2)  ;;  %v308_v26 = vld [vmem:[%s763_s2 + $0x20] sm:$0xff] (!%p138_p2)  ;;  %v204_v42 = vand.u32 (!%p138_p2), 127, %v203_v41  ;;  %v206_v43 = vshrl.u32 (!%p138_p2), %v203_v41, 7 }
   0x8   : > { %571 = vmatpush3.bf16.msra.mxu0 (!%p138_p2), %v570_v14  ;;  %v579_v25 = vpack.c.bf16 (!%p138_p2), %v307_v24, %v306_v22  ;;  %v309_v27 = vld [vmem:[%s763_s2 + $0x28] sm:$0xff] (!%p138_p2)  ;;  %v310_v29 = vld [vmem:[%s763_s2 + $0x30] sm:$0xff] (!%p138_p2)  ;;  %v311_v30 = vld [vmem:[%s763_s2 + $0x38] sm:$0xff] (!%p138_p2)  ;;  %vm221_vm2 = vcmask (!%p138_p2), 195712   ;;  %vm228_vm3 = vcmask (!%p138_p2), 261312   ;;  %vm230_vm4 = vcmask (!%p138_p2), 261120  }
   0x9   : > { %572 = vmatprep.subr.bf16.mxu0 (!%p138_p2), %v622_v15  ;;  %577 = vmatpush3.bf16.msra.mxu1 (!%p138_p2), %v576_v23  ;;  %v582_v28 = vpack.c.bf16 (!%p138_p2), %v309_v27, %v308_v26  ;;  %v585_v31 = vpack.c.bf16 (!%p138_p2), %v311_v30, %v310_v29  ;;  %v312_v32 = vld [vmem:[%s763_s2 + $0x40] sm:$0xff] (!%p138_p2)  ;;  %v313_v33 = vld [vmem:[%s763_s2 + $0x48] sm:$0xff] (!%p138_p2)  ;;  %v314_v35 = vld [vmem:[%s763_s2 + $0x50] sm:$0xff] (!%p138_p2)  ;;  %v209_v44 = vadd.s32 (!%p138_p2), 4294967288, %v204_v42  ;;  %v216_v46 = vadd.s32 (!%p138_p2), 4294967280, %v204_v42 }
   0xa   : > { %578 = vmatprep.subr.bf16.mxu1 (!%p138_p2), %v622_v15  ;;  %v588_v34 = vpack.c.bf16 (!%p138_p2), %v313_v33, %v312_v32  ;;  %v315_v36 = vld [vmem:[%s763_s2 + $0x58] sm:$0xff] (!%p138_p2)  ;;  %v316_v38 = vld [vmem:[%s763_s2 + $0x60] sm:$0xff] (!%p138_p2)  ;;  %v317_v39 = vld [vmem:[%s763_s2 + $0x68] sm:$0xff] (!%p138_p2)  ;;  %v223_v47 = vadd.s32 (!%p138_p2), 4294967272, %v204_v42  ;;  %v207_v49 = vsub.s32 (!%p138_p2), %v204_v42, %v206_v43  ;;  %v398_v21 = vsub.s32 (!%p138_p2), 0, %v206_v43 }
   0xb   : > { %v591_v37 = vpack.c.bf16 (!%p138_p2), %v315_v36, %v314_v35  ;;  %v594_v40 = vpack.c.bf16 (!%p138_p2), %v317_v39, %v316_v38  ;;  %v212_v51 = vsub.s32 (!%p138_p2), %v209_v44, %v206_v43  ;;  %v219_v52 = vsub.s32 (!%p138_p2), %v216_v46, %v206_v43 }
   0xc   : > { %574 = vmatpush3.bf16.msra.mxu0 (!%p138_p2), %v573_v18  ;;  %v226_v55 = vsub.s32 (!%p138_p2), %v223_v47, %v206_v43 }
   0xd   : > { %s766_s13 = smov (!%p161_p3, %s486_s13), 1  ;;  %580 = vmatpush3.bf16.msra.mxu1 %v579_v25 }
   0xe   : > { %s499_s14 = sshll.u32 %s766_s13, 6  ;;  %581 = vmatprep.subr.bf16.mxu1 %v622_v15 }
   0xf   : > { %s165_s17 = scalar_lea.vmem %s761_s0, %s499_s14  ;;  %s170_s9 = scalar_lea.vmem %s764_s3, %s499_s14 }
  0x10   : > { %v661_v0 = vld [vmem:[%s165_s17] sm:$0xff]  ;;  %v663_v1 = vld [vmem:[%s165_s17 + $0x8] sm:$0xff]  ;;  %v671_v5 = vld [vmem:[%s165_s17 + $0x10] sm:$0xff] }
  0x11   : > { %v665_v2 = vld [vmem:[%s165_s17 + $0x20] sm:$0xff]  ;;  %v179_v3 = vadd.f32 %v663_v1, %v661_v0  ;;  %v669_v4 = vld [vmem:[%s165_s17 + $0x28] sm:$0xff]  ;;  %v673_v6 = vld [vmem:[%s165_s17 + $0x18] sm:$0xff]  ;;  %583 = vmatpush3.bf16.msra.mxu1 %v582_v28 }
  0x12   : > { %v185_v7 = vadd.f32 %v669_v4, %v665_v2  ;;  %v677_v8 = vld [vmem:[%s165_s17 + $0x30] sm:$0xff]  ;;  %v679_v9 = vld [vmem:[%s165_s17 + $0x38] sm:$0xff]  ;;  %v182_v10 = vadd.f32 %v673_v6, %v671_v5  ;;  %584 = vmatprep.subr.bf16.mxu1 %v622_v15 }
  0x13   : > { %180 = vadd.xlane.f32.xlu0 %v179_v3  ;;  %v188_v11 = vadd.f32 %v679_v9, %v677_v8 }
  0x14   : > { %186 = vadd.xlane.f32.xlu1 %v185_v7 }
  0x15   : > { %586 = vmatpush3.bf16.msra.mxu1 %v585_v31 }
  0x16   : > { %587 = vmatprep.subr.bf16.mxu1 %v622_v15 }
  0x17   : > { %183 = vadd.xlane.f32.xlu0 %v182_v10  ;;  %v318_v10 = vld [vmem:[%s763_s2 + $0x70] sm:$0xff] }
  0x18   : > { %189 = vadd.xlane.f32.xlu1 %v188_v11  ;;  %v319_v11 = vld [vmem:[%s763_s2 + $0x78] sm:$0xff] }
  0x19   : > { %589 = vmatpush3.bf16.msra.mxu1 %v588_v34  ;;  %v597_v12 = vpack.c.bf16 %v319_v11, %v318_v10 }
  0x1a   : > { %590 = vmatprep.subr.bf16.mxu1 %v622_v15 }
  0x1d   : > { %592 = vmatpush3.bf16.msra.mxu1 %v591_v37 }
  0x1e   : > { %593 = vmatprep.subr.bf16.mxu1 %v622_v15 }
  0x21   : > { %595 = vmatpush3.bf16.msra.mxu1 %v594_v40 }
  0x22   : > { %596 = vmatprep.subr.bf16.mxu1 %v622_v15 }
  0x25   : > { %598 = vmatpush3.bf16.msra.mxu1 %v597_v12 }
  0xa0   : > { %v181_v45 = vpop.xlane.xlu0 %180 }
  0xa1   : > { %v187_v48 = vpop.xlane.xlu1 %186  ;;  %v191_v50 = vmul.f32 0.00390625, %v181_v45 }
  0xa2   : > { %v193_v53 = vmul.f32 0.00390625, %v187_v48 }
  0xa3   : > { %v208_v59 = vrot.slane %v191_v50, %v207_v49 }
  0xa4   : > { %v184_v54 = vpop.xlane.xlu0 %183  ;;  %v220_v61 = vrot.slane %v193_v53, %v219_v52 }
  0xa5   : > { %v192_v56 = vmul.f32 0.00390625, %v184_v54  ;;  %v190_v57 = vpop.xlane.xlu1 %189 }
  0xa6   : > { %v194_v58 = vmul.f32 0.00390625, %v190_v57 }
  0xa7   : > { %v213_v60 = vrot.slane %v192_v56, %v212_v51 }
  0xa8   : > { %v227_v62 = vrot.slane %v194_v58, %v226_v55 }
  0xa9   : > { %v215_v63 = vsel %vm214_vm1, %v213_v60, %v208_v59 }
  0xaa   : > { %v222_v3 = vsel %vm221_vm2, %v220_v61, %v215_v63 }
  0xab   : > { %v229_v7 = vsel %vm228_vm3, %v227_v62, %v222_v3 }
  0xac   : > { %532 = vmatmul.mubr.msk.f32.vlgmr.msra.gmra.mrb[0].mxu0 %vm230_vm4, %v229_v7 }
 0x17f   : > { %v299_v13 = vpop.f32.mrb[0].mxu0 }
 0x180   : > { %v303_v14 = vmax.f32 %v299_v13, 0.0  ;;  %v533_v15 = vpop.f32.mrb[1].mxu0 }
 0x182   : > { %567 = vmatmul.mubr.f32.vlgmr.msra.gmra.mrb[0].mxu1 %v303_v14 }
 0x255   : > { %v386_v16 = vpop.f32.mrb[0].mxu1 }
 0x256   : > { %v496_v17 = vmul.f32 -1.442695, %v386_v16  ;;  %v568_v18 = vpop.f32.mrb[1].mxu1 }
 0x258   : > { %610 = vpow2.f32 %v496_v17 }
 0x262   : > { %v611_v19 = vpop.eup %610 }
 0x263   : > { %v393_v20 = vadd.f32 1.0, %v611_v19 }
 0x265   : > { %612 = vrcp.f32 %v393_v20 }
 0x26f   : > { %v613_v22 = vpop.eup %612 }
 0x270   : > { %v399_v23 = vrot.slane %v613_v22, %v398_v21 }
 0x272   : > { %405 = vbcast.lane.b32.xlu1 %v399_v23, 264  ;;  %401 = vbcast.lane.b32.xlu0 %v399_v23, 256 }
 0x276   : > { %409 = vbcast.lane.b32.xlu1 %v399_v23, 272 }
 0x27a   : > { %413 = vbcast.lane.b32.xlu1 %v399_v23, 280 }
 0x2e4   : > { %v406_v24 = vpop.permute.xlu1 %405  ;;  %v402_v25 = vpop.permute.xlu0 %401 }
 0x2e5   : > { %v417_v26 = vmul.f32 %v406_v24, %v671_v5  ;;  %v418_v27 = vmul.f32 %v406_v24, %v673_v6  ;;  %v415_v28 = vmul.f32 %v402_v25, %v661_v0  ;;  %v416_v29 = vmul.f32 %v402_v25, %v663_v1 }
 0x2e7   : > { %425 = vst [vmem:[%s170_s9 + $0x10] sm:$0xff] %v417_v26  ;;  %426 = vst [vmem:[%s170_s9 + $0x18] sm:$0xff] %v418_v27 }
 0x2e8   : > { %423 = vst [vmem:[%s170_s9] sm:$0xff] %v415_v28  ;;  %424 = vst [vmem:[%s170_s9 + $0x8] sm:$0xff] %v416_v29  ;;  %v410_v30 = vpop.permute.xlu1 %409 }
 0x2e9   : > { %v419_v31 = vmul.f32 %v410_v30, %v665_v2  ;;  %v420_v32 = vmul.f32 %v410_v30, %v669_v4 }
 0x2eb   : > { %427 = vst [vmem:[%s170_s9 + $0x20] sm:$0xff] %v419_v31  ;;  %428 = vst [vmem:[%s170_s9 + $0x28] sm:$0xff] %v420_v32 }
 0x2ec   : > { %v414_v33 = vpop.permute.xlu1 %413 }
 0x2ed   : > { %v421_v5 = vmul.f32 %v414_v33, %v677_v8  ;;  %v422_v6 = vmul.f32 %v414_v33, %v679_v9 }
 0x2ef   : > { %429 = vst [vmem:[%s170_s9 + $0x30] sm:$0xff] %v421_v5  ;;  %430 = vst [vmem:[%s170_s9 + $0x38] sm:$0xff] %v422_v6 }
 0x2f0 PF: > { %s13_s12 = sadd.s32 1, %s620_s12  }
 0x2f1   : > { %p10_p4 = scmp.ge.s32.totalorder %s13_s12, 4  }
 0x2f3   :  { %12 = sbr.rel (!%p10_p4) target bundleno = 1 (0x1), region = 62 }

</bundles_post_ra>
